<compile_context>
chip_gen: v6e
topology: v6e:2x2x1
jax: 0.10.0
libtpu: 0.0.40
codegen_flags: <defaults>
</compile_context>

<pallas_src>
import functools

import jax
import jax.numpy as jnp
from jax import lax
from jax.experimental import pallas as pl
from jax.experimental.pallas import tpu as pltpu


def _round_up(x, m):
    return ((x + m - 1) // m) * m


def _flash_graph_attn_kernel(xq_ref, xkv_ref, wq_ref, bq_ref, wkv_ref, bkv_ref,
                             out_ref, q_sc, m_sc, l_sc,
                             *, kp, tk, n_real, mask_keys):
    j = pl.program_id(1)
    last_j = pl.num_programs(1) - 1

    # --- per q-tile init (kv axis is last / fastest varying) ---------------
    @pl.when(j == 0)
    def _init():
        # Q projection once per q-tile; 1/sqrt(key_dim) already folded into
        # wq/bq by the wrapper.
        q = jnp.dot(xq_ref[...], wq_ref[...],
                    preferred_element_type=jnp.float32) + bq_ref[...]
        q_sc[...] = jnp.maximum(q, 0.0)
        m_sc[...] = jnp.full_like(m_sc, -jnp.inf)
        l_sc[...] = jnp.zeros_like(l_sc)
        out_ref[...] = jnp.zeros_like(out_ref)      # output block = accumulator

    # --- fused K|V projection for this kv tile (single MXU matmul) ---------
    kv = jnp.dot(xkv_ref[...], wkv_ref[...],
                 preferred_element_type=jnp.float32) + bkv_ref[...]
    kv = jnp.maximum(kv, 0.0)                       # [tk, kp + vp]
    k = kv[:, :kp]                                  # [tk, kp]   (lane-aligned slice)
    v = kv[:, kp:]                                  # [tk, vp]

    # --- scores: contract the feature axis directly (no k.T materialized) --
    s = lax.dot_general(q_sc[...], k, (((1,), (1,)), ((), ())),
                        preferred_element_type=jnp.float32)   # [tq, tk]

    if mask_keys:  # only emitted when N was padded up to a tile multiple
        kv_idx = j * tk + lax.broadcasted_iota(jnp.int32, (1, tk), 1)
        s = jnp.where(kv_idx < n_real, s, -jnp.inf)

    # --- online softmax accumulation ---------------------------------------
    m_prev = m_sc[...]
    m_new = jnp.maximum(m_prev, jnp.max(s, axis=1, keepdims=True))
    alpha = jnp.exp(m_prev - m_new)
    p = jnp.exp(s - m_new)
    l_sc[...] = alpha * l_sc[...] + jnp.sum(p, axis=1, keepdims=True)
    out_ref[...] = alpha * out_ref[...] + jnp.dot(
        p, v, preferred_element_type=jnp.float32)
    m_sc[...] = m_new

    # --- finalize this q-tile -----------------------------------------------
    @pl.when(j == last_j)
    def _finalize():
        out_ref[...] = out_ref[...] * pl.reciprocal(l_sc[...], approx=False)


def graph_attention_net(x, wq, bq, wk, bk, wv, bv, *, block_n=None,
                        matmul_dtype=jnp.float32):
    """x: [N, in_dim]; w*: [in_dim, out_dim]; b*: [1, out_dim] (or [out_dim]).

    Returns [value_dim] = max over nodes of softmax(q k^T / sqrt(key_dim)) v.
    """
    n, in_dim = x.shape
    key_dim = wq.shape[1]
    value_dim = wv.shape[1]

    kp = _round_up(key_dim, 128)      # lane-pad key dim
    vp = _round_up(value_dim, 128)    # lane-pad value dim

    scale = 1.0 / (key_dim ** 0.5)    # folded into the Q projection

    def pad_cols(w, b, out_pad, s=1.0):
        w = w.astype(jnp.float32) * s
        b = jnp.reshape(b, (1, -1)).astype(jnp.float32) * s
        w = jnp.pad(w, ((0, 0), (0, out_pad - w.shape[1])))
        b = jnp.pad(b, ((0, 0), (0, out_pad - b.shape[1])))
        return w, b

    wq_p, bq_p = pad_cols(wq, bq, kp, scale)
    wk_p, bk_p = pad_cols(wk, bk, kp)
    wv_p, bv_p = pad_cols(wv, bv, vp)
    wkv = jnp.concatenate([wk_p, wv_p], axis=1)     # [in_dim, kp + vp]
    bkv = jnp.concatenate([bk_p, bv_p], axis=1)     # [1, kp + vp]

    # Tile size over nodes (same for q and kv tiles); sized well under the
    # 32 MiB scoped / 64 MiB v7x VMEM budget.
    if block_n is None:
        block_n = min(_round_up(n, 8), 256)
    t = block_n
    n_pad = _round_up(n, t)

    x_p = jnp.pad(x.astype(jnp.float32), ((0, n_pad - n), (0, 0)))

    if matmul_dtype == jnp.bfloat16:
        # Optional bf16 matmul inputs (v6e/v7x); accumulation stays f32.
        x_p = x_p.astype(jnp.bfloat16)
        wq_p = wq_p.astype(jnp.bfloat16)
        wkv = wkv.astype(jnp.bfloat16)

    grid = (n_pad // t, n_pad // t)

    kernel = functools.partial(
        _flash_graph_attn_kernel,
        kp=kp, tk=t, n_real=n, mask_keys=(n_pad != n))

    out = pl.pallas_call(
        kernel,
        out_shape=jax.ShapeDtypeStruct((n_pad, vp), jnp.float32),
        grid_spec=pltpu.PrefetchScalarGridSpec(
            num_scalar_prefetch=0,
            grid=grid,
            in_specs=[
                pl.BlockSpec((t, in_dim), lambda i, j: (i, 0)),        # x (q rows)
                pl.BlockSpec((t, in_dim), lambda i, j: (j, 0)),        # x (kv rows)
                pl.BlockSpec((in_dim, kp), lambda i, j: (0, 0)),       # Wq (scaled)
                pl.BlockSpec((1, kp), lambda i, j: (0, 0)),            # bq (scaled)
                pl.BlockSpec((in_dim, kp + vp), lambda i, j: (0, 0)),  # Wk|Wv fused
                pl.BlockSpec((1, kp + vp), lambda i, j: (0, 0)),       # bk|bv fused
            ],
            out_specs=pl.BlockSpec((t, vp), lambda i, j: (i, 0)),
            scratch_shapes=[
                pltpu.VMEM((t, kp), jnp.float32),   # cached Q for this q-tile
                pltpu.VMEM((t, 1), jnp.float32),    # running max m
                pltpu.VMEM((t, 1), jnp.float32),    # running denom l
            ]),
        compiler_params=pltpu.CompilerParams(
            dimension_semantics=("parallel", "arbitrary"),
            vmem_limit_bytes=32 * 1024 * 1024),
    )(x_p, x_p, wq_p, bq_p, wkv, bkv)

    # Final max over nodes (dim=0) on the valid, un-padded slab.
    return jnp.max(out[:n, :value_dim], axis=0)


def init_params(key, in_dim, key_dim, value_dim):
    """Deterministic synthetic init mirroring the module's shapes.

    kaiming_normal_ on weights (fan_in = in_dim, gain sqrt(2)); biases use
    PyTorch Linear's default U(-1/sqrt(fan_in), 1/sqrt(fan_in))."""
    ks = jax.random.split(key, 6)
    std = (2.0 / in_dim) ** 0.5
    bound = 1.0 / (in_dim ** 0.5)
    wq = std * jax.random.normal(ks[0], (in_dim, key_dim), jnp.float32)
    wk = std * jax.random.normal(ks[1], (in_dim, key_dim), jnp.float32)
    wv = std * jax.random.normal(ks[2], (in_dim, value_dim), jnp.float32)
    bq = jax.random.uniform(ks[3], (1, key_dim), jnp.float32, -bound, bound)
    bk = jax.random.uniform(ks[4], (1, key_dim), jnp.float32, -bound, bound)
    bv = jax.random.uniform(ks[5], (1, value_dim), jnp.float32, -bound, bound)
    return wq, bq, wk, bk, wv, bv


def reference(x, wq, bq, wk, bk, wv, bv):
    q = jax.nn.relu(x @ wq + bq)
    k = jax.nn.relu(x @ wk + bk)
    v = jax.nn.relu(x @ wv + bv)
    s = (q @ k.T) / (k.shape[1] ** 0.5)
    a = jax.nn.softmax(s, axis=1)
    return jnp.max(a @ v, axis=0)


if __name__ == "__main__":
    # Small shapes consistent with the module (N=8 nodes, in_dim=32,
    # key_dim=value_dim=16).
    N, IN_DIM, KEY_DIM, VALUE_DIM = 8, 32, 16, 16
    key = jax.random.PRNGKey(0)
    kx, kp_ = jax.random.split(key)
    x = jax.random.normal(kx, (N, IN_DIM), jnp.float32)
    params = init_params(kp_, IN_DIM, KEY_DIM, VALUE_DIM)

    out = graph_attention_net(x, *params)
    out = jax.block_until_ready(out)

    ref = reference(x, *params)
    assert out.shape == (VALUE_DIM,)
    assert jnp.allclose(out, ref, atol=1e-5, rtol=1e-5)
    print("KERNEL_OK")
</pallas_src>

<mosaic_0001>
module attributes {stable_mosaic.version = 11 : i64} {
  func.func @_flash_graph_attn_kernel(%arg0: i32, %arg1: i32, %arg2: memref<8x32xf32, #tpu.memory_space<vmem>>, %arg3: memref<8x32xf32, #tpu.memory_space<vmem>>, %arg4: memref<32x128xf32, #tpu.memory_space<vmem>>, %arg5: memref<1x128xf32, #tpu.memory_space<vmem>>, %arg6: memref<32x256xf32, #tpu.memory_space<vmem>>, %arg7: memref<1x256xf32, #tpu.memory_space<vmem>>, %arg8: memref<8x128xf32, #tpu.memory_space<vmem>>, %arg9: memref<8x128xf32, #tpu.memory_space<vmem>>, %arg10: memref<8x1xf32, #tpu.memory_space<vmem>>, %arg11: memref<8x1xf32, #tpu.memory_space<vmem>>) attributes {dimension_semantics = [#tpu.dimension_semantics<parallel>, #tpu.dimension_semantics<arbitrary>], iteration_bounds = array<i64: 1, 1>, scalar_prefetch = 0 : i64, scratch_operands = 3 : i64, tpu.core_type = #tpu.core_type<tc>, window_params = [{transform_indices = @transform_0, window_bounds = array<i64: 8, 32>}, {transform_indices = @transform_1, window_bounds = array<i64: 8, 32>}, {pipeline_mode = #tpu.pipeline_mode<synchronous>, transform_indices = @transform_2, window_bounds = array<i64: 32, 128>}, {pipeline_mode = #tpu.pipeline_mode<synchronous>, transform_indices = @transform_3, window_bounds = array<i64: 1, 128>}, {pipeline_mode = #tpu.pipeline_mode<synchronous>, transform_indices = @transform_4, window_bounds = array<i64: 32, 256>}, {pipeline_mode = #tpu.pipeline_mode<synchronous>, transform_indices = @transform_5, window_bounds = array<i64: 1, 256>}, {transform_indices = @transform_6, window_bounds = array<i64: 8, 128>}]} {
    %c0_i32 = arith.constant 0 : i32
    %0 = arith.cmpi eq, %arg1, %c0_i32 : i32
    %1 = arith.extui %0 : i1 to i32
    %c0_i32_0 = arith.constant 0 : i32
    %2 = arith.cmpi ne, %1, %c0_i32_0 : i32
    scf.if %2 {
      %c0_27 = arith.constant 0 : index
      %c0_28 = arith.constant 0 : index
      %40 = vector.load %arg2[%c0_27, %c0_28] : memref<8x32xf32, #tpu.memory_space<vmem>>, vector<8x32xf32>
      %c0_29 = arith.constant 0 : index
      %c0_30 = arith.constant 0 : index
      %41 = vector.load %arg4[%c0_29, %c0_30] : memref<32x128xf32, #tpu.memory_space<vmem>>, vector<32x128xf32>
      %cst_31 = arith.constant dense<0.000000e+00> : vector<8x128xf32>
      %42 = tpu.matmul %40, %41, %cst_31 {dimension_numbers = #tpu.dot_dimension_numbers<[1], [0], [0], [1], [0, 0, 1, 1], [], []>} : vector<8x32xf32>, vector<32x128xf32>, vector<8x128xf32> -> vector<8x128xf32>
      %c0_32 = arith.constant 0 : index
      %c0_33 = arith.constant 0 : index
      %43 = vector.load %arg5[%c0_32, %c0_33] : memref<1x128xf32, #tpu.memory_space<vmem>>, vector<1x128xf32>
      %44 = vector.broadcast %43 : vector<1x128xf32> to vector<8x128xf32>
      %45 = arith.addf %42, %44 : vector<8x128xf32>
      %cst_34 = arith.constant 0.000000e+00 : f32
      %46 = vector.broadcast %cst_34 : f32 to vector<8x128xf32>
      %47 = arith.maximumf %45, %46 : vector<8x128xf32>
      %c0_35 = arith.constant 0 : index
      %c0_36 = arith.constant 0 : index
      %48 = vector.load %arg9[%c0_35, %c0_36] : memref<8x128xf32, #tpu.memory_space<vmem>>, vector<8x128xf32>
      tpu.vector_store %arg9[%c0_35, %c0_36], %47 {strides = array<i32>} : memref<8x128xf32, #tpu.memory_space<vmem>>, vector<8x128xf32>,
      %cst_37 = arith.constant 0xFF800000 : f32
      %49 = vector.broadcast %cst_37 : f32 to vector<8x1xf32>
      %c0_38 = arith.constant 0 : index
      %c0_39 = arith.constant 0 : index
      %50 = vector.load %arg10[%c0_38, %c0_39] : memref<8x1xf32, #tpu.memory_space<vmem>>, vector<8x1xf32>
      tpu.vector_store %arg10[%c0_38, %c0_39], %49 {strides = array<i32>} : memref<8x1xf32, #tpu.memory_space<vmem>>, vector<8x1xf32>,
      %cst_40 = arith.constant 0.000000e+00 : f32
      %51 = vector.broadcast %cst_40 : f32 to vector<8x1xf32>
      %c0_41 = arith.constant 0 : index
      %c0_42 = arith.constant 0 : index
      %52 = vector.load %arg11[%c0_41, %c0_42] : memref<8x1xf32, #tpu.memory_space<vmem>>, vector<8x1xf32>
      tpu.vector_store %arg11[%c0_41, %c0_42], %51 {strides = array<i32>} : memref<8x1xf32, #tpu.memory_space<vmem>>, vector<8x1xf32>,
      %cst_43 = arith.constant 0.000000e+00 : f32
      %53 = vector.broadcast %cst_43 : f32 to vector<8x128xf32>
      %c0_44 = arith.constant 0 : index
      %c0_45 = arith.constant 0 : index
      %54 = vector.load %arg8[%c0_44, %c0_45] : memref<8x128xf32, #tpu.memory_space<vmem>>, vector<8x128xf32>
      tpu.vector_store %arg8[%c0_44, %c0_45], %53 {strides = array<i32>} : memref<8x128xf32, #tpu.memory_space<vmem>>, vector<8x128xf32>,
    } else {
    }
    %c0 = arith.constant 0 : index
    %c0_1 = arith.constant 0 : index
    %3 = vector.load %arg3[%c0, %c0_1] : memref<8x32xf32, #tpu.memory_space<vmem>>, vector<8x32xf32>
    %c0_2 = arith.constant 0 : index
    %c0_3 = arith.constant 0 : index
    %4 = vector.load %arg6[%c0_2, %c0_3] : memref<32x256xf32, #tpu.memory_space<vmem>>, vector<32x256xf32>
    %cst = arith.constant dense<0.000000e+00> : vector<8x256xf32>
    %5 = tpu.matmul %3, %4, %cst {dimension_numbers = #tpu.dot_dimension_numbers<[1], [0], [0], [1], [0, 0, 1, 1], [], []>} : vector<8x32xf32>, vector<32x256xf32>, vector<8x256xf32> -> vector<8x256xf32>
    %c0_4 = arith.constant 0 : index
    %c0_5 = arith.constant 0 : index
    %6 = vector.load %arg7[%c0_4, %c0_5] : memref<1x256xf32, #tpu.memory_space<vmem>>, vector<1x256xf32>
    %7 = vector.broadcast %6 : vector<1x256xf32> to vector<8x256xf32>
    %8 = arith.addf %5, %7 : vector<8x256xf32>
    %cst_6 = arith.constant 0.000000e+00 : f32
    %9 = vector.broadcast %cst_6 : f32 to vector<8x256xf32>
    %10 = arith.maximumf %8, %9 : vector<8x256xf32>
    %11 = vector.extract_strided_slice %10 {offsets = [0, 0], sizes = [8, 128], strides = [1, 1]} : vector<8x256xf32> to vector<8x128xf32>
    %12 = vector.extract_strided_slice %10 {offsets = [0, 128], sizes = [8, 128], strides = [1, 1]} : vector<8x256xf32> to vector<8x128xf32>
    %c0_7 = arith.constant 0 : index
    %c0_8 = arith.constant 0 : index
    %13 = vector.load %arg9[%c0_7, %c0_8] : memref<8x128xf32, #tpu.memory_space<vmem>>, vector<8x128xf32>
    %cst_9 = arith.constant dense<0.000000e+00> : vector<8x8xf32>
    %14 = tpu.matmul %13, %11, %cst_9 {dimension_numbers = #tpu.dot_dimension_numbers<[1], [1], [0], [0], [0, 0, 1, 0], [], []>} : vector<8x128xf32>, vector<8x128xf32>, vector<8x8xf32> -> vector<8x8xf32>
    %c0_10 = arith.constant 0 : index
    %c0_11 = arith.constant 0 : index
    %15 = vector.load %arg10[%c0_10, %c0_11] : memref<8x1xf32, #tpu.memory_space<vmem>>, vector<8x1xf32>
    %cst_12 = arith.constant dense<0xFF800000> : vector<8xf32>
    %16 = vector.multi_reduction <maximumf>, %14, %cst_12 [1] : vector<8x8xf32> to vector<8xf32>
    %17 = vector.shape_cast %16 : vector<8xf32> to vector<8x1xf32>
    %18 = arith.maximumf %15, %17 : vector<8x1xf32>
    %19 = arith.subf %15, %18 : vector<8x1xf32>
    %20 = math.exp %19 : vector<8x1xf32>
    %21 = vector.broadcast %18 : vector<8x1xf32> to vector<8x8xf32>
    %22 = arith.subf %14, %21 : vector<8x8xf32>
    %23 = math.exp %22 : vector<8x8xf32>
    %c0_13 = arith.constant 0 : index
    %c0_14 = arith.constant 0 : index
    %24 = vector.load %arg11[%c0_13, %c0_14] : memref<8x1xf32, #tpu.memory_space<vmem>>, vector<8x1xf32>
    %25 = arith.mulf %20, %24 : vector<8x1xf32>
    %cst_15 = arith.constant dense<0.000000e+00> : vector<8xf32>
    %26 = vector.multi_reduction <add>, %23, %cst_15 [1] : vector<8x8xf32> to vector<8xf32>
    %27 = vector.shape_cast %26 : vector<8xf32> to vector<8x1xf32>
    %28 = arith.addf %25, %27 : vector<8x1xf32>
    %c0_16 = arith.constant 0 : index
    %c0_17 = arith.constant 0 : index
    %29 = vector.load %arg11[%c0_16, %c0_17] : memref<8x1xf32, #tpu.memory_space<vmem>>, vector<8x1xf32>
    tpu.vector_store %arg11[%c0_16, %c0_17], %28 {strides = array<i32>} : memref<8x1xf32, #tpu.memory_space<vmem>>, vector<8x1xf32>,
    %c0_18 = arith.constant 0 : index
    %c0_19 = arith.constant 0 : index
    %30 = vector.load %arg8[%c0_18, %c0_19] : memref<8x128xf32, #tpu.memory_space<vmem>>, vector<8x128xf32>
    %31 = vector.broadcast %20 : vector<8x1xf32> to vector<8x128xf32>
    %32 = arith.mulf %31, %30 : vector<8x128xf32>
    %cst_20 = arith.constant dense<0.000000e+00> : vector<8x128xf32>
    %33 = tpu.matmul %23, %12, %cst_20 {dimension_numbers = #tpu.dot_dimension_numbers<[1], [0], [0], [1], [0, 0, 1, 1], [], []>} : vector<8x8xf32>, vector<8x128xf32>, vector<8x128xf32> -> vector<8x128xf32>
    %34 = arith.addf %32, %33 : vector<8x128xf32>
    %c0_21 = arith.constant 0 : index
    %c0_22 = arith.constant 0 : index
    %35 = vector.load %arg8[%c0_21, %c0_22] : memref<8x128xf32, #tpu.memory_space<vmem>>, vector<8x128xf32>
    tpu.vector_store %arg8[%c0_21, %c0_22], %34 {strides = array<i32>} : memref<8x128xf32, #tpu.memory_space<vmem>>, vector<8x128xf32>,
    %c0_23 = arith.constant 0 : index
    %c0_24 = arith.constant 0 : index
    %36 = vector.load %arg10[%c0_23, %c0_24] : memref<8x1xf32, #tpu.memory_space<vmem>>, vector<8x1xf32>
    tpu.vector_store %arg10[%c0_23, %c0_24], %18 {strides = array<i32>} : memref<8x1xf32, #tpu.memory_space<vmem>>, vector<8x1xf32>,
    %c0_i32_25 = arith.constant 0 : i32
    %37 = arith.cmpi eq, %arg1, %c0_i32_25 : i32
    %38 = arith.extui %37 : i1 to i32
    %c0_i32_26 = arith.constant 0 : i32
    %39 = arith.cmpi ne, %38, %c0_i32_26 : i32
    scf.if %39 {
      %c0_27 = arith.constant 0 : index
      %c0_28 = arith.constant 0 : index
      %40 = vector.load %arg8[%c0_27, %c0_28] : memref<8x128xf32, #tpu.memory_space<vmem>>, vector<8x128xf32>
      %c0_29 = arith.constant 0 : index
      %c0_30 = arith.constant 0 : index
      %41 = vector.load %arg11[%c0_29, %c0_30] : memref<8x1xf32, #tpu.memory_space<vmem>>, vector<8x1xf32>
      %42 = tpu.reciprocal %41 : vector<8x1xf32> -> vector<8x1xf32>
      %43 = vector.broadcast %42 : vector<8x1xf32> to vector<8x128xf32>
      %44 = arith.mulf %40, %43 : vector<8x128xf32>
      %c0_31 = arith.constant 0 : index
      %c0_32 = arith.constant 0 : index
      %45 = vector.load %arg8[%c0_31, %c0_32] : memref<8x128xf32, #tpu.memory_space<vmem>>, vector<8x128xf32>
      tpu.vector_store %arg8[%c0_31, %c0_32], %44 {strides = array<i32>} : memref<8x128xf32, #tpu.memory_space<vmem>>, vector<8x128xf32>,
    } else {
    }
    return
  }
  func.func @transform_0(%arg0: i32, %arg1: i32) -> (i32, i32) {
    %c0_i32 = arith.constant 0 : i32
    %c0_i32_0 = arith.constant 0 : i32
    return %arg0, %c0_i32 : i32, i32
  }
  func.func @transform_1(%arg0: i32, %arg1: i32) -> (i32, i32) {
    %c0_i32 = arith.constant 0 : i32
    %c0_i32_0 = arith.constant 0 : i32
    return %arg1, %c0_i32 : i32, i32
  }
  func.func @transform_2(%arg0: i32, %arg1: i32) -> (i32, i32) {
    %c0_i32 = arith.constant 0 : i32
    %c0_i32_0 = arith.constant 0 : i32
    %c0_i32_1 = arith.constant 0 : i32
    return %c0_i32, %c0_i32_0 : i32, i32
  }
  func.func @transform_3(%arg0: i32, %arg1: i32) -> (i32, i32) {
    %c0_i32 = arith.constant 0 : i32
    %c0_i32_0 = arith.constant 0 : i32
    %c0_i32_1 = arith.constant 0 : i32
    return %c0_i32, %c0_i32_0 : i32, i32
  }
  func.func @transform_4(%arg0: i32, %arg1: i32) -> (i32, i32) {
    %c0_i32 = arith.constant 0 : i32
    %c0_i32_0 = arith.constant 0 : i32
    %c0_i32_1 = arith.constant 0 : i32
    return %c0_i32, %c0_i32_0 : i32, i32
  }
  func.func @transform_5(%arg0: i32, %arg1: i32) -> (i32, i32) {
    %c0_i32 = arith.constant 0 : i32
    %c0_i32_0 = arith.constant 0 : i32
    %c0_i32_1 = arith.constant 0 : i32
    return %c0_i32, %c0_i32_0 : i32, i32
  }
  func.func @transform_6(%arg0: i32, %arg1: i32) -> (i32, i32) {
    %c0_i32 = arith.constant 0 : i32
    %c0_i32_0 = arith.constant 0 : i32
    return %arg0, %c0_i32 : i32, i32
  }
}

</mosaic_0001>

<bundles_post_ra>
// kernel: tpu_custom_call.1
= control target key start
LH: loop header
LB: loop body
LE: loop exit
PB: predicated region body
PF: predicated region fallthrough
CT: control target
= control target key end

     0   :  { %11 = vsyncpa [#allocation6], 0  ;;  %s731_s0 = inlined_call_operand.hbm [shape: f32[8,32], index: 0, kind: input, shape index: {}]   ;;  %s732_s1 = inlined_call_operand.hbm [shape: f32[8,32], index: 1, kind: input, shape index: {}]   ;;  %s733_s2 = inlined_call_operand.hbm [shape: f32[32,128], index: 2, kind: input, shape index: {}]   ;;  %s734_s3 = inlined_call_operand.vmem [shape: f32[1,128], index: 3, kind: input, shape index: {}]   ;;  %s735_s4 = inlined_call_operand.hbm [shape: f32[32,256], index: 4, kind: input, shape index: {}]   ;;  %s736_s5 = inlined_call_operand.vmem [shape: f32[1,256], index: 5, kind: input, shape index: {}]   ;;  %s737_s6 = inlined_call_operand.hbm [shape: f32[8,128], index: 6, kind: output, shape index: {}]  }
   0x1   :  { %12 = vsyncpa [#allocation9], 0 }
   0x2   :  { %13 = vsyncpa [#allocation12], 0 }
   0x3   :  { %14 = vsyncpa [#allocation7], 0  ;;  %s641_s21 = smov [#allocation8]   ;;  %s642_s23 = smov [#allocation5]  }
   0x4   :  { %s31_s22 = sshll.u32 %s641_s21, 4  ;;  %s21_s24 = sshll.u32 %s642_s23, 4  ;;  %s32_s22 = int_to_ptr.vmem [resolvable:$true] %s31_s22  ;;  %s22_s24 = int_to_ptr.vmem [resolvable:$true] %s21_s24 }
   0x5   :  { %s541_s25 = scalar_lea.vmem %s32_s22, 128  ;;  %p546_p1 = scmp.lt.s32.totalorder %s32_s22, %s32_s22 }
   0x6   :  { %p542_p0 = scmp.ne.s32.totalorder %s32_s22, %s541_s25  ;;  %p547_p2 = scmp.lt.s32.totalorder %s541_s25, %s541_s25 }
   0x8   :  { %p548_p3 = por %p547_p2, %p546_p1 }
   0xa   :  { %p549_p4 = pnand %p548_p3, %p542_p0 }
   0xc   :  { %552 = shalt.err (!%p549_p4)
}
   0xd   :  { %34 = dma.hbm_to_vmem [thread:$0]  %s732_s1, 128, %s32_s22, [#allocation9]  }
   0xe   :  { %s561_s28 = scalar_lea.vmem %s22_s24, 128  ;;  %p566_p6 = scmp.lt.s32.totalorder %s22_s24, %s22_s24 }
   0xf   :  { %p562_p5 = scmp.ne.s32.totalorder %s22_s24, %s561_s28  ;;  %p567_p7 = scmp.lt.s32.totalorder %s561_s28, %s561_s28 }
  0x11   :  { %p568_p8 = por %p567_p7, %p566_p6 }
  0x13   :  { %p569_p9 = pnand %p568_p8, %p562_p5 }
  0x15   :  { %572 = shalt.err (!%p569_p9)
}
  0x16   :  { %24 = dma.hbm_to_vmem [thread:$0]  %s731_s0, 128, %s22_s24, [#allocation6]  }
  0x17   :  { %s643_s7 = smov [#allocation10]  }
  0x18   :  { %s40_s8 = sshll.u32 %s643_s7, 4  ;;  %s41_s8 = int_to_ptr.vmem [resolvable:$true] %s40_s8 }
  0x19   :  { %s581_s9 = scalar_lea.vmem %s41_s8, 512  ;;  %p586_p11 = scmp.lt.s32.totalorder %s41_s8, %s41_s8 }
  0x1a   :  { %p582_p10 = scmp.ne.s32.totalorder %s41_s8, %s581_s9  ;;  %p587_p12 = scmp.lt.s32.totalorder %s581_s9, %s581_s9 }
  0x1c   :  { %p588_p13 = por %p587_p12, %p586_p11 }
  0x1e   :  { %p589_p0 = pnand %p588_p13, %p582_p10 }
  0x20   :  { %592 = shalt.err (!%p589_p0)
}
  0x21   :  { %s644_s1 = smov 128   ;;  %s645_s10 = smov 8  }
  0x22   :  { %46 = dma.hbm_to_vmem [thread:$0]  %s733_s2, 512, %s41_s8, [#allocation9], %s644_s1, %s644_s1, %s645_s10  }
  0x23   :  { %s646_s13 = smov [#allocation11]  }
  0x24   :  { %s54_s14 = sshll.u32 %s646_s13, 4  ;;  %s55_s14 = int_to_ptr.vmem [resolvable:$true] %s54_s14 }
  0x25   :  { %s601_s0 = scalar_lea.vmem %s55_s14, 1024  ;;  %p606_p2 = scmp.lt.s32.totalorder %s55_s14, %s55_s14 }
  0x26   :  { %p602_p1 = scmp.ne.s32.totalorder %s55_s14, %s601_s0  ;;  %p607_p3 = scmp.lt.s32.totalorder %s601_s0, %s601_s0 }
  0x28   :  { %p608_p4 = por %p607_p3, %p606_p2 }
  0x2a   :  { %p609_p5 = pnand %p608_p4, %p602_p1 }
  0x2c   :  { %612 = shalt.err (!%p609_p5)
}
  0x2d   :  { %s647_s15 = smov 256   ;;  %s648_s16 = smov 16  }
  0x2e   :  { %60 = dma.hbm_to_vmem [thread:$0]  %s735_s4, 1024, %s55_s14, [#allocation12], %s647_s15, %s647_s15, %s648_s16  }
  0x2f   :  { %633 = dma.done.wait [#allocation6], 128  }
  0x30   :  { %634 = vsyncadd [#allocation6], 4294967168 }
  0x31   :  { %635 = dma.done.wait [#allocation9], 640  }
  0x32   :  { %636 = vsyncadd [#allocation9], 4294966656 }
  0x33   :  { %637 = dma.done.wait [#allocation12], 1024  }
  0x34   :  { %638 = vsyncadd [#allocation12], 4294966272  ;;  %v649_v0 = vmov 0.0   ;;  %vm650_vm0 = vmmov 0   ;;  %v179_v1 = vld [vmem:[#allocation11 + $0x38] sm:$0xff]  ;;  %v178_v2 = vld [vmem:[#allocation11 + $0x30] sm:$0xff]  ;;  %v182_v15 = vlaneseq }
  0x35   :  { %491 = vmatprep.subr.mxu0 %v649_v0  ;;  %260 = vmatprep.mubr.f32.mxu1 %v649_v0  ;;  %v177_v3 = vld [vmem:[#allocation11 + $0x28] sm:$0xff]  ;;  %v83_v4 = vld [vmem:[#allocation10 + $0x18] sm:$0xff]  ;;  %v176_v5 = vld [vmem:[#allocation11 + $0x20] sm:$0xff]  ;;  %vm91_vm1 = vcmask 261120   ;;  %vm167_vm2 = vcmask 7168   ;;  %v651_v33 = vmov -inf  }
  0x36   :  { %499 = vmatprep.mubr.msk.f32.mxu0 %vm650_vm0, %v649_v0  ;;  %220 = vmatprep.subr.mxu1 %v179_v1  ;;  %v175_v6 = vld [vmem:[#allocation11 + $0x18] sm:$0xff]  ;;  %v82_v7 = vld [vmem:[#allocation10 + $0x10] sm:$0xff]  ;;  %v81_v9 = vld [vmem:[#allocation10 + $0x8] sm:$0xff]  ;;  %v183_v16 = vshrl.u32 %v182_v15, 7  ;;  %168 = vst.msk [vmem:[#allocation3] sm:$0xff] %vm167_vm2, %v651_v33  ;;  %vm341_vm3 = vcmask 64512  }
  0x37   :  { %221 = vmatpush1.msra.mxu1 %v178_v2  ;;  %492 = vmatpush3.msra.mxu0 %v83_v4  ;;  %v174_v8 = vld [vmem:[#allocation11 + $0x10] sm:$0xff]  ;;  %v173_v10 = vld [vmem:[#allocation11 + $0x8] sm:$0xff]  ;;  %v172_v11 = vld [vmem:[#allocation11] sm:$0xff]  ;;  %169 = vst.msk [vmem:[#allocation4] sm:$0xff] %vm167_vm2, %v649_v0  ;;  %v652_v37 = vmov 0  }
  0x38   :  { %222 = vmatprep.subr.mxu1 %v177_v3  ;;  %493 = vmatprep.subr.mxu0 %v649_v0  ;;  %v80_v12 = vld [vmem:[#allocation10] sm:$0xff]  ;;  %v171_v13 = vld [vmem:[#allocation8] sm:$0xff]  ;;  %v79_v14 = vld [vmem:[#allocation5] sm:$0xff]  ;;  %v184_v17 = vsub.s32 0, %v183_v16  ;;  %v188_v19 = vsub.s32 1, %v183_v16 }
  0x39   :  { %223 = vmatpush1.msra.mxu1 %v176_v5  ;;  %494 = vmatpush3.msra.mxu0 %v82_v7  ;;  %v180_v18 = vld [vmem:[%s736_s5] sm:$0x3] }
  0x3a   :  { %224 = vmatprep.subr.mxu1 %v175_v6  ;;  %495 = vmatprep.subr.mxu0 %v649_v0  ;;  %v185_v20 = vrot.slane %v180_v18, %v184_v17  ;;  %v478_v21 = vld [vmem:[%s734_s3] ss:$0 sm:$0xff]  ;;  %v189_v22 = vrot.slane %v180_v18, %v188_v19  ;;  %s653_s3 = smov [#allocation13]  }
  0x3b   :  { %225 = vmatpush1.msra.mxu1 %v174_v8  ;;  %496 = vmatpush3.msra.mxu0 %v81_v9  ;;  %s467_s5 = sshll.u32 %s653_s3, 4  ;;  %s468_s5 = int_to_ptr.vmem [resolvable:$true] %s467_s5 }
  0x3c   :  { %226 = vmatprep.subr.mxu1 %v173_v10  ;;  %497 = vmatprep.subr.mxu0 %v649_v0  ;;  %s613_s21 = scalar_lea.vmem %s468_s5, 128  ;;  %p618_p7 = scmp.lt.s32.totalorder %s468_s5, %s468_s5 }
  0x3d   :  { %227 = vmatpush1.msra.mxu1 %v172_v11  ;;  %498 = vmatpush3.msra.mxu0 %v80_v12  ;;  %v340_v38 = vld [vmem:[#allocation3] sm:$0xff]  ;;  %p614_p6 = scmp.ne.s32.totalorder %s468_s5, %s613_s21  ;;  %p619_p8 = scmp.lt.s32.totalorder %s613_s21, %s613_s21 }
  0x3e   :  { %480 = vmatmul.mubr.msk.f32.vlgmr.msra.gmra.mxu1 %vm91_vm1, %v171_v13  ;;  %500 = vmatmul.mubr.msk.f32.vlgmr.msra.gmra.mxu0 %vm91_vm1, %v79_v14  ;;  %v357_v49 = vld [vmem:[#allocation4] sm:$0xff] }
  0x3f   :  { %502 = vmatprep.subr.mxu0 %v649_v0  ;;  %507 = vmatprep.subr.mxu1 %v649_v0  ;;  %p620_p9 = por %p619_p8, %p618_p7 }
  0x40   :  { %504 = vmatprep.mubr.msk.f32.mxu0 %vm650_vm0, %v649_v0  ;;  %509 = vmatprep.mubr.msk.f32.mxu1 %vm650_vm0, %v649_v0 }
  0x41   :  { %525 = vset.pattern.permute.xlu0 %v652_v37  ;;  %526 = vset.pattern.permute.xlu1 %v652_v37  ;;  %p621_p10 = pnand %p620_p9, %p614_p6 }
  0xfe   :  { %v262_v23 = vpop.f32.mrf.mxu1  ;;  %v161_v24 = vpop.f32.mrf.mxu0 }
  0xff   :  { %v263_v25 = vadd.f32 %v262_v23, %v185_v20  ;;  %v162_v26 = vadd.f32 %v478_v21, %v161_v24 }
 0x100   :  { %v264_v27 = vpop.f32.mrf.mxu1  ;;  %v501_v28 = vpop.f32.mrf.mxu0 }
 0x101   :  { %v267_v29 = vmax.f32 %v263_v25, 0.0  ;;  %v265_v30 = vadd.f32 %v264_v27, %v189_v22  ;;  %v165_v31 = vmax.f32 %v162_v26, 0.0 }
 0x103   :  { %v268_v32 = vmax.f32 %v265_v30, 0.0  ;;  %503 = vmatpush3.xpose.msra.mxu0 %v267_v29 }
 0x105   :  { %508 = vmatpush3.msra.mxu1 %v268_v32 }
 0x106   :  { %505 = vmatmul.mubr.f32.vlgmr.msra.gmra.mxu0 %v165_v31 }
 0x1c6   :  { %v336_v34 = vpop.f32.mrf.mxu0 }
 0x1c7   :  { %v342_v35 = vsel %vm341_vm3, %v336_v34, -inf }
 0x1c8   :  { %343 = vmax.xlane.f32.xlu0 %v342_v35  ;;  %v506_v36 = vpop.f32.mrf.mxu0 }
 0x251   :  { %v344_v39 = vpop.xlane.xlu0 %343 }
 0x252   :  { %v345_v40 = vmax.f32 %v340_v38, %v344_v39 }
 0x254   :  { %v346_v41 = vsub.f32 %v340_v38, %v345_v40  ;;  %447 = vst.msk [vmem:[#allocation3] sm:$0xff] %vm167_vm2, %v345_v40  ;;  %351 = vperm.xlu0 %525, %v345_v40  }
 0x256   :  { %v347_v46 = vmul.f32 1.442695, %v346_v41 }
 0x2cf   :  { %v352_v42 = vpop.permute.xlu0 %351 }
 0x2d0   :  { %v354_v43 = vsub.f32 %v336_v34, %v352_v42 }
 0x2d2   :  { %v355_v44 = vmul.f32 1.442695, %v354_v43 }
 0x2d4   :  { %527 = vpow2.f32 %v355_v44 }
 0x2d5   :  { %529 = vpow2.f32 %v347_v46 }
 0x2e1   :  { %v528_v45 = vpop.eup %527 }
 0x2e2   :  { %510 = vmatmul.mubr.msk.f32.vlgmr.msra.gmra.mxu1 %vm341_vm3, %v528_v45  ;;  %v359_v47 = vsel %vm341_vm3, %v528_v45, 0.0  ;;  %v530_v48 = vpop.eup %529 }
 0x2e3   :  { %360 = vadd.xlane.f32.xlu1 %v359_v47  ;;  %v358_v50 = vmul.f32 %v530_v48, %v357_v49 }
 0x2f4   :  { %368 = vperm.xlu1 %526, %v530_v48  }
 0x36c   :  { %v361_v51 = vpop.xlane.xlu1 %360 }
 0x36d   :  { %v362_v52 = vadd.f32 %v361_v51, %v358_v50 }
 0x36f   :  { %364 = vst.msk [vmem:[#allocation4] sm:$0xff] %vm167_vm2, %v362_v52 }
 0x370   :  { %v369_v57 = vpop.permute.xlu1 %368 }
 0x371   :  { %v371_v58 = vmul.f32 0.0, %v369_v57 }
 0x376   :  { %v452_v53 = vld [vmem:[#allocation4] sm:$0xff] }
 0x377   :  { %531 = vrcp.f32 %v452_v53 }
 0x384   :  { %v532_v54 = vpop.eup %531 }
 0x385   :  { %456 = vperm.xlu1 %526, %v532_v54  }
 0x3a2   :  { %v441_v55 = vpop.f32.mrf.mxu1 }
 0x3a3   :  { %v445_v59 = vadd.f32 %v441_v55, %v371_v58 }
 0x3a4   :  { %v511_v56 = vpop.f32.mrf.mxu1 }
 0x400   :  { %v457_v60 = vpop.permute.xlu1 %456 }
 0x401   :  { %v459_v61 = vmul.f32 %v457_v60, %v445_v59 }
 0x403   :  { %460 = vst [vmem:[#allocation13] sm:$0xff] %v459_v61 }
 0x404   :  { %624 = shalt.err (!%p621_p10)
}
 0x405   :  { %470 = dma.vmem_to_hbm [thread:$0]  %s468_s5, 128, %s737_s6, [#allocation7]  }
 0x406   :  { %639 = dma.done.wait [#allocation7], 128  }
 0x407   :  { %640 = vsyncadd [#allocation7], 4294967168 }
 0x408   :  { %474 = vsyncpa [#allocation6], 1 }
 0x409   :  { %475 = vsyncpa [#allocation9], 1 }
 0x40a   :  { %476 = vsyncpa [#allocation12], 1 }
 0x40b   :  { %477 = vsyncpa [#allocation7], 1 }

</bundles_post_ra>
